<compile_context>
chip_gen: v7x
topology: tpu7x:2x2x1
jax: 0.10.0
libtpu: 0.0.40
codegen_flags: <defaults>
</compile_context>

<pallas_src>
import functools

import jax
import jax.numpy as jnp
from jax.experimental import pallas as pl
from jax.experimental.pallas import tpu as pltpu

P_DROP = 0.1


def _dropout_matmul_kernel(p_ref, m_ref, v_ref, o_ref, *, scale):
    # p_ref/m_ref: (G, S, S) bf16   v_ref: (G, S, D) bf16   o_ref: (G, S, D) f32
    dropped = p_ref[...] * m_ref[...]                      # bf16, mask is {0, 1}
    acc = jnp.einsum("gqk,gkd->gqd", dropped, v_ref[...],
                     preferred_element_type=jnp.float32)   # MXU, f32 accumulate
    # Apply the 1/(1-p) dropout scale on the small (G, S, D) result,
    # not the big (G, S, S) operand.
    o_ref[...] = acc * jnp.float32(scale)


def _heads_per_step(bh):
    for g in (4, 3, 2):
        if bh % g == 0:
            return g
    return 1


@functools.partial(jax.jit, static_argnames=("p",))
def dropout_matmul(x304, x293, key, p=P_DROP):
    """x304: [B, H, S, S], x293: [B, H, S, D] -> [B, H, S, D] float32."""
    B, H, S, S2 = x304.shape
    assert S == S2
    _, _, _, D = x293.shape
    BH = B * H
    G = _heads_per_step(BH)
    scale = 1.0 / (1.0 - p)

    # Dropout keep-mask (train mode), deterministic per key.
    keep = jax.random.bernoulli(key, 1.0 - p, (BH, S, S))
    mask = keep.astype(jnp.bfloat16)

    p_flat = x304.reshape(BH, S, S).astype(jnp.bfloat16)
    v_flat = x293.reshape(BH, S, D).astype(jnp.bfloat16)

    kernel = functools.partial(_dropout_matmul_kernel, scale=scale)

    out_flat = pl.pallas_call(
        kernel,
        out_shape=jax.ShapeDtypeStruct((BH, S, D), jnp.float32),
        grid_spec=pltpu.PrefetchScalarGridSpec(
            num_scalar_prefetch=0,
            grid=(BH // G,),
            in_specs=[
                pl.BlockSpec((G, S, S), lambda i: (i, 0, 0)),
                pl.BlockSpec((G, S, S), lambda i: (i, 0, 0)),
                pl.BlockSpec((G, S, D), lambda i: (i, 0, 0)),
            ],
            out_specs=pl.BlockSpec((G, S, D), lambda i: (i, 0, 0)),
        ),
        compiler_params=pltpu.CompilerParams(
            dimension_semantics=("parallel",),   # head blocks are independent
        ),
    )(p_flat, mask, v_flat)

    return out_flat.reshape(B, H, S, D)


if __name__ == "__main__":
    # Small shapes consistent with the module's [1, 12, 384, 64] convention.
    B, H, S, D = 1, 8, 128, 64
    key = jax.random.PRNGKey(0)
    k_probs, k_vals, k_drop = jax.random.split(key, 3)

    x304 = jax.random.normal(k_probs, (B, H, S, S), dtype=jnp.float32)  # probs
    x293 = jax.random.normal(k_vals, (B, H, S, D), dtype=jnp.float32)   # values

    out = dropout_matmul(x304, x293, k_drop)
    out = jax.block_until_ready(out)

    assert out.shape == (B, H, S, D)
    assert out.dtype == jnp.float32
    assert bool(jnp.all(jnp.isfinite(out)))

    # Reference check with the same (deterministic) dropout mask and casts.
    keep = jax.random.bernoulli(k_drop, 1.0 - P_DROP, (B * H, S, S))
    mask_bf16 = keep.astype(jnp.bfloat16).reshape(B, H, S, S)
    dropped = (x304.astype(jnp.bfloat16) * mask_bf16).astype(jnp.float32)
    ref = jnp.einsum("bhqk,bhkd->bhqd", dropped,
                     x293.astype(jnp.bfloat16).astype(jnp.float32))
    ref = ref * (1.0 / (1.0 - P_DROP))
    assert bool(jnp.allclose(out, ref, rtol=1e-2, atol=1e-2))

    print("KERNEL_OK")
</pallas_src>

<mosaic_0001>
module attributes {stable_mosaic.version = 11 : i64} {
  func.func @_dropout_matmul_kernel(%arg0: i32, %arg1: memref<4x128x128xbf16, #tpu.memory_space<vmem>>, %arg2: memref<4x128x128xbf16, #tpu.memory_space<vmem>>, %arg3: memref<4x128x64xbf16, #tpu.memory_space<vmem>>, %arg4: memref<4x128x64xf32, #tpu.memory_space<vmem>>) attributes {dimension_semantics = [#tpu.dimension_semantics<parallel>], iteration_bounds = array<i64: 2>, scalar_prefetch = 0 : i64, scratch_operands = 0 : i64, tpu.core_type = #tpu.core_type<tc>, window_params = [{transform_indices = @transform_0, window_bounds = array<i64: 4, 128, 128>}, {transform_indices = @transform_1, window_bounds = array<i64: 4, 128, 128>}, {transform_indices = @transform_2, window_bounds = array<i64: 4, 128, 64>}, {transform_indices = @transform_3, window_bounds = array<i64: 4, 128, 64>}]} {
    %c0 = arith.constant 0 : index
    %c0_0 = arith.constant 0 : index
    %c0_1 = arith.constant 0 : index
    %0 = vector.load %arg1[%c0, %c0_0, %c0_1] : memref<4x128x128xbf16, #tpu.memory_space<vmem>>, vector<4x128x128xbf16>
    %c0_2 = arith.constant 0 : index
    %c0_3 = arith.constant 0 : index
    %c0_4 = arith.constant 0 : index
    %1 = vector.load %arg2[%c0_2, %c0_3, %c0_4] : memref<4x128x128xbf16, #tpu.memory_space<vmem>>, vector<4x128x128xbf16>
    %2 = arith.mulf %0, %1 : vector<4x128x128xbf16>
    %c0_5 = arith.constant 0 : index
    %c0_6 = arith.constant 0 : index
    %c0_7 = arith.constant 0 : index
    %3 = vector.load %arg3[%c0_5, %c0_6, %c0_7] : memref<4x128x64xbf16, #tpu.memory_space<vmem>>, vector<4x128x64xbf16>
    "tpu.trace_start"() <{level = 10 : i32, message = "gqk,gkd->gqd"}> : () -> ()
    %cst = arith.constant dense<0.000000e+00> : vector<4x128x64xf32>
    %4 = tpu.matmul %2, %3, %cst {dimension_numbers = #tpu.dot_dimension_numbers<[2], [1], [1], [2], [0, 0, 0, 1, 1, 2], [0], [0]>} : vector<4x128x128xbf16>, vector<4x128x64xbf16>, vector<4x128x64xf32> -> vector<4x128x64xf32>
    "tpu.trace_stop"() : () -> ()
    %cst_8 = arith.constant 1.11111116 : f32
    %5 = vector.broadcast %cst_8 : f32 to vector<4x128x64xf32>
    %6 = arith.mulf %4, %5 : vector<4x128x64xf32>
    %c0_9 = arith.constant 0 : index
    %c0_10 = arith.constant 0 : index
    %c0_11 = arith.constant 0 : index
    %7 = vector.load %arg4[%c0_9, %c0_10, %c0_11] : memref<4x128x64xf32, #tpu.memory_space<vmem>>, vector<4x128x64xf32>
    tpu.vector_store %arg4[%c0_9, %c0_10, %c0_11], %6 {strides = array<i32>} : memref<4x128x64xf32, #tpu.memory_space<vmem>>, vector<4x128x64xf32>,
    return
  }
  func.func @transform_0(%arg0: i32) -> (i32, i32, i32) {
    %c0_i32 = arith.constant 0 : i32
    %c0_i32_0 = arith.constant 0 : i32
    %c0_i32_1 = arith.constant 0 : i32
    return %arg0, %c0_i32, %c0_i32_0 : i32, i32, i32
  }
  func.func @transform_1(%arg0: i32) -> (i32, i32, i32) {
    %c0_i32 = arith.constant 0 : i32
    %c0_i32_0 = arith.constant 0 : i32
    %c0_i32_1 = arith.constant 0 : i32
    return %arg0, %c0_i32, %c0_i32_0 : i32, i32, i32
  }
  func.func @transform_2(%arg0: i32) -> (i32, i32, i32) {
    %c0_i32 = arith.constant 0 : i32
    %c0_i32_0 = arith.constant 0 : i32
    %c0_i32_1 = arith.constant 0 : i32
    return %arg0, %c0_i32, %c0_i32_0 : i32, i32, i32
  }
  func.func @transform_3(%arg0: i32) -> (i32, i32, i32) {
    %c0_i32 = arith.constant 0 : i32
    %c0_i32_0 = arith.constant 0 : i32
    %c0_i32_1 = arith.constant 0 : i32
    return %arg0, %c0_i32, %c0_i32_0 : i32, i32, i32
  }
}

</mosaic_0001>

<bundles_post_ra>
// kernel: dropout_matmul.1
= control target key start
LH: loop header
LB: loop body
LE: loop exit
PB: predicated region body
PF: predicated region fallthrough
CT: control target
= control target key end

     0   :  { %s1816_s12 = smov 0   ;;  %s2139_s0 = inlined_call_operand.vmem [shape: bf16[8,128,128], index: 0, kind: input, shape index: {}]   ;;  %s2140_s1 = inlined_call_operand.vmem [shape: bf16[8,128,128], index: 1, kind: input, shape index: {}]   ;;  %s2141_s2 = inlined_call_operand.vmem [shape: bf16[8,128,64], index: 2, kind: input, shape index: {}]   ;;  %s2142_s3 = inlined_call_operand.vmem [shape: f32[8,128,64], index: 3, kind: output, shape index: {}]  }
   0x1 LB: > { %s1469_s13 = sadd.s32 4294967295, %s1794_s12   ;;  %p1473_p0 = scmp.ge.s32.totalorder %s1794_s12, 1  ;;  %s1794_s12 = sphi %s1816_s12, %s13_s12  }
   0x2   : > { %p163_p1 = scmp.lt.s32.totalorder %s1794_s12, 3 }
   0x4   : > { %p164_p2 = pnand %p1473_p0, %p163_p1 }
   0x5   : > { %s1474_s14 = sshll.u32 (!%p164_p2), %s1469_s13, 2  ;;  %vm1322_vm0 = vcmask (!%p164_p2), 523264  }
   0x6   : > { %167 = sbr.rel (%p164_p2) target bundleno = 324 (0x144), region = 32  ;;  %p202_p3 = scmp.lt.s32.totalorder (!%p164_p2), %s1474_s14, 7 }
   0xd   : > { %s2144_s14 = smov (!%p202_p3, %s1474_s14), 7 }
   0xe   : > { %s1552_s15 = sshll.u32 %s2144_s14, 6  ;;  %s1555_s25 = sshll.u32 %s2144_s14, 7 }
   0xf   : > { %s1830_s18 = scalar_lea.vmem %s2141_s2, %s1552_s15  ;;  %s1845_s21 = scalar_lea.vmem %s2139_s0, %s1552_s15 }
  0x10   : > { %v1756_v0 = vld [vmem:[%s1830_s18] sm:$0xff]   ;;  %v1758_v2 = vld [vmem:[%s1830_s18 + $0x8] sm:$0xff]   ;;  %v1760_v4 = vld [vmem:[%s1830_s18 + $0x10] sm:$0xff]   ;;  %s1850_s24 = scalar_lea.vmem %s2140_s1, %s1552_s15  ;;  %s2006_s28 = scalar_lea.vmem %s2142_s3, %s1555_s25 }
  0x11   : > { %v1757_v1 = vld [vmem:[%s1830_s18 + $0x40] sm:$0xff]   ;;  %1620 = vmatprep.subr.bf16.mxu0 %v1756_v0  ;;  %v1759_v3 = vld [vmem:[%s1830_s18 + $0x48] sm:$0xff]   ;;  %v1761_v5 = vld [vmem:[%s1830_s18 + $0x50] sm:$0xff]  }
  0x12   : > { %1652 = vmatprep.subr.bf16.mxu1 %v1757_v1  ;;  %1621 = vmatpush3.bf16.msra.mxu0 %v1756_v0  ;;  %v1762_v6 = vld [vmem:[%s1830_s18 + $0x18] sm:$0xff]   ;;  %v1764_v8 = vld [vmem:[%s1830_s18 + $0x20] sm:$0xff]   ;;  %v1766_v10 = vld [vmem:[%s1830_s18 + $0x28] sm:$0xff]  }
  0x13   : > { %1653 = vmatpush3.bf16.msra.mxu1 %v1757_v1  ;;  %1622 = vmatprep.subr.bf16.mxu0 %v1758_v2  ;;  %v1763_v7 = vld [vmem:[%s1830_s18 + $0x58] sm:$0xff]   ;;  %v1765_v9 = vld [vmem:[%s1830_s18 + $0x60] sm:$0xff]   ;;  %v1767_v11 = vld [vmem:[%s1830_s18 + $0x68] sm:$0xff]  }
  0x14   : > { %1654 = vmatprep.subr.bf16.mxu1 %v1759_v3  ;;  %v230_v12 = vld [vmem:[%s1845_s21] sm:$0xf]  ;;  %v231_v13 = vld [vmem:[%s1845_s21 + $0x4] sm:$0xf]  ;;  %v1768_v24 = vld [vmem:[%s1830_s18 + $0x30] sm:$0xff]  }
  0x15   : > { %v294_v14 = vld [vmem:[%s1850_s24] sm:$0xf]  ;;  %v295_v15 = vld [vmem:[%s1850_s24 + $0x4] sm:$0xf]  ;;  %v1769_v25 = vld [vmem:[%s1830_s18 + $0x70] sm:$0xff]  }
  0x16   : > { %1623 = vmatpush3.bf16.msra.mxu0 %v1758_v2  ;;  %v358_v16 = vmul.bf16 %v294_v14, %v230_v12  ;;  %v246_v17 = vld [vmem:[%s1845_s21 + $0x40] sm:$0xf]  ;;  %v247_v18 = vld [vmem:[%s1845_s21 + $0x44] sm:$0xf]  ;;  %v359_v19 = vmul.bf16 %v295_v15, %v231_v13  ;;  %v232_v28 = vld [vmem:[%s1845_s21 + $0x8] sm:$0xf] }
  0x17   : > { %1655 = vmatpush3.bf16.msra.mxu1 %v1759_v3  ;;  %1624 = vmatprep.subr.bf16.mxu0 %v1760_v4  ;;  %v310_v20 = vld [vmem:[%s1850_s24 + $0x40] sm:$0xf]  ;;  %v311_v21 = vld [vmem:[%s1850_s24 + $0x44] sm:$0xf]  ;;  %v233_v29 = vld [vmem:[%s1845_s21 + $0xc] sm:$0xf] }
  0x18   : > { %1656 = vmatprep.subr.bf16.mxu1 %v1761_v5  ;;  %v374_v22 = vmul.bf16 %v310_v20, %v246_v17  ;;  %v375_v23 = vmul.bf16 %v311_v21, %v247_v18  ;;  %v1486_v26 = vcombine.low %v358_v16, %v359_v19  ;;  %v296_v30 = vld [vmem:[%s1850_s24 + $0x8] sm:$0xf]  ;;  %v297_v31 = vld [vmem:[%s1850_s24 + $0xc] sm:$0xf]  ;;  %v1770_v32 = vld [vmem:[%s1830_s18 + $0x38] sm:$0xff]  }
  0x19   : > { %v248_v33 = vld [vmem:[%s1845_s21 + $0x48] sm:$0xf]  ;;  %v249_v34 = vld [vmem:[%s1845_s21 + $0x4c] sm:$0xf]  ;;  %v1771_v37 = vld [vmem:[%s1830_s18 + $0x78] sm:$0xff]   ;;  %v360_v40 = vmul.bf16 %v296_v30, %v232_v28  ;;  %v361_v41 = vmul.bf16 %v297_v31, %v233_v29 }
  0x1a   : > { %1625 = vmatpush3.bf16.msra.mxu0 %v1760_v4  ;;  %v1502_v27 = vcombine.low %v374_v22, %v375_v23  ;;  %1636 = vmatprep.mubr.bf16.mxu0 %v1486_v26  ;;  %v312_v35 = vld [vmem:[%s1850_s24 + $0x48] sm:$0xf]  ;;  %v313_v36 = vld [vmem:[%s1850_s24 + $0x4c] sm:$0xf]  ;;  %v234_v38 = vld [vmem:[%s1845_s21 + $0x10] sm:$0xf] }
  0x1b   : > { %1657 = vmatpush3.bf16.msra.mxu1 %v1761_v5  ;;  %1626 = vmatprep.subr.bf16.mxu0 %v1762_v6  ;;  %v235_v39 = vld [vmem:[%s1845_s21 + $0x14] sm:$0xf]  ;;  %v298_v42 = vld [vmem:[%s1850_s24 + $0x10] sm:$0xf]  ;;  %v376_v45 = vmul.bf16 %v312_v35, %v248_v33  ;;  %v377_v46 = vmul.bf16 %v313_v36, %v249_v34  ;;  %v1772_v50 = vld [vmem:[%s1830_s18 + $0x80] sm:$0xff]   ;;  %v1487_v58 = vcombine.low %v360_v40, %v361_v41 }
  0x1c   : > { %1658 = vmatprep.subr.bf16.mxu1 %v1763_v7  ;;  %1668 = vmatprep.mubr.bf16.mxu1 %v1502_v27  ;;  %v299_v43 = vld [vmem:[%s1850_s24 + $0x14] sm:$0xf]  ;;  %v250_v44 = vld [vmem:[%s1845_s21 + $0x50] sm:$0xf]  ;;  %v1773_v51 = vld [vmem:[%s1830_s18 + $0xc0] sm:$0xff]   ;;  %v362_v52 = vmul.bf16 %v298_v42, %v234_v38 }
  0x1d   : > { %v251_v47 = vld [vmem:[%s1845_s21 + $0x54] sm:$0xf]  ;;  %v314_v48 = vld [vmem:[%s1850_s24 + $0x50] sm:$0xf]  ;;  %v363_v53 = vmul.bf16 %v299_v43, %v235_v39  ;;  %v236_v54 = vld [vmem:[%s1845_s21 + $0x18] sm:$0xf]  ;;  %v1503_v0 = vcombine.low %v376_v45, %v377_v46 }
  0x1e   : > { %1627 = vmatpush3.bf16.msra.mxu0 %v1762_v6  ;;  %v315_v49 = vld [vmem:[%s1850_s24 + $0x54] sm:$0xf]  ;;  %v237_v55 = vld [vmem:[%s1845_s21 + $0x1c] sm:$0xf]  ;;  %v300_v56 = vld [vmem:[%s1850_s24 + $0x18] sm:$0xf]  ;;  %v378_v60 = vmul.bf16 %v314_v48, %v250_v44 }
  0x1f   : > { %1659 = vmatpush3.bf16.msra.mxu1 %v1763_v7  ;;  %1628 = vmatprep.subr.bf16.mxu0 %v1764_v8  ;;  %v301_v57 = vld [vmem:[%s1850_s24 + $0x1c] sm:$0xf]  ;;  %v1774_v59 = vld [vmem:[%s1830_s18 + $0x88] sm:$0xff]   ;;  %v379_v61 = vmul.bf16 %v315_v49, %v251_v47  ;;  %v252_v62 = vld [vmem:[%s1845_s21 + $0x58] sm:$0xf]  ;;  %v1488_v4 = vcombine.low %v362_v52, %v363_v53  ;;  %v364_v6 = vmul.bf16 %v300_v56, %v236_v54 }
  0x20   : > { %1660 = vmatprep.subr.bf16.mxu1 %v1765_v9  ;;  %v253_v63 = vld [vmem:[%s1845_s21 + $0x5c] sm:$0xf]  ;;  %v316_v1 = vld [vmem:[%s1850_s24 + $0x58] sm:$0xf]  ;;  %v1775_v3 = vld [vmem:[%s1830_s18 + $0xc8] sm:$0xff]   ;;  %v365_v7 = vmul.bf16 %v301_v57, %v237_v55 }
  0x21   : > { %v317_v2 = vld [vmem:[%s1850_s24 + $0x5c] sm:$0xf]  ;;  %v1504_v5 = vcombine.low %v378_v60, %v379_v61  ;;  %v239_v12 = vld [vmem:[%s1845_s21 + $0x24] sm:$0xf]  ;;  %v302_v13 = vld [vmem:[%s1850_s24 + $0x20] sm:$0xf] }
  0x22   : > { %1629 = vmatpush3.bf16.msra.mxu0 %v1764_v8  ;;  %v1776_v8 = vld [vmem:[%s1830_s18 + $0x90] sm:$0xff]   ;;  %v303_v14 = vld [vmem:[%s1850_s24 + $0x24] sm:$0xf]  ;;  %v254_v15 = vld [vmem:[%s1845_s21 + $0x60] sm:$0xf]  ;;  %v1489_v23 = vcombine.low %v364_v6, %v365_v7 }
  0x23   : > { %1661 = vmatpush3.bf16.msra.mxu1 %v1765_v9  ;;  %1630 = vmatprep.subr.bf16.mxu0 %v1766_v10  ;;  %v238_v9 = vld [vmem:[%s1845_s21 + $0x20] sm:$0xf]  ;;  %v255_v16 = vld [vmem:[%s1845_s21 + $0x64] sm:$0xf]  ;;  %v1777_v18 = vld [vmem:[%s1830_s18 + $0xd0] sm:$0xff]   ;;  %v367_v20 = vmul.bf16 %v303_v14, %v239_v12 }
  0x24   : > { %1662 = vmatprep.subr.bf16.mxu1 %v1767_v11  ;;  %v318_v17 = vld [vmem:[%s1850_s24 + $0x60] sm:$0xf]  ;;  %v366_v19 = vmul.bf16 %v302_v13, %v238_v9  ;;  %v319_v21 = vld [vmem:[%s1850_s24 + $0x64] sm:$0xf]  ;;  %v240_v22 = vld [vmem:[%s1845_s21 + $0x28] sm:$0xf] }
  0x25   : > { %v383_v26 = vmul.bf16 %v319_v21, %v255_v16  ;;  %v241_v27 = vld [vmem:[%s1845_s21 + $0x2c] sm:$0xf]  ;;  %v304_v28 = vld [vmem:[%s1850_s24 + $0x28] sm:$0xf]  ;;  %v1779_v35 = vld [vmem:[%s1830_s18 + $0xd8] sm:$0xff]  }
  0x26   : > { %1631 = vmatpush3.bf16.msra.mxu0 %v1766_v10  ;;  %v380_v10 = vmul.bf16 %v316_v1, %v252_v62  ;;  %v305_v29 = vld [vmem:[%s1850_s24 + $0x2c] sm:$0xf]  ;;  %v256_v31 = vld [vmem:[%s1845_s21 + $0x68] sm:$0xf]  ;;  %v1490_v36 = vcombine.low %v366_v19, %v367_v20  ;;  %v368_v38 = vmul.bf16 %v304_v28, %v240_v22  ;;  %v1780_v40 = vld [vmem:[%s1830_s18 + $0xa0] sm:$0xff]  }
  0x27   : > { %1663 = vmatpush3.bf16.msra.mxu1 %v1767_v11  ;;  %1632 = vmatprep.subr.bf16.mxu0 %v1768_v24  ;;  %v381_v11 = vmul.bf16 %v317_v2, %v253_v63  ;;  %v320_v33 = vld [vmem:[%s1850_s24 + $0x68] sm:$0xf]  ;;  %v321_v34 = vld [vmem:[%s1850_s24 + $0x6c] sm:$0xf]  ;;  %v369_v39 = vmul.bf16 %v305_v29, %v241_v27  ;;  %v1781_v43 = vld [vmem:[%s1830_s18 + $0xe0] sm:$0xff]  }
  0x28   : > { %1664 = vmatprep.subr.bf16.mxu1 %v1769_v25  ;;  %v384_v41 = vmul.bf16 %v320_v33, %v256_v31  ;;  %v242_v44 = vld [vmem:[%s1845_s21 + $0x30] sm:$0xf]  ;;  %v243_v45 = vld [vmem:[%s1845_s21 + $0x34] sm:$0xf]  ;;  %v1782_v52 = vld [vmem:[%s1830_s18 + $0xa8] sm:$0xff]  }
  0x29   : > { %v1505_v30 = vcombine.low %v380_v10, %v381_v11  ;;  %v306_v46 = vld [vmem:[%s1850_s24 + $0x30] sm:$0xf]  ;;  %v307_v47 = vld [vmem:[%s1850_s24 + $0x34] sm:$0xf]  ;;  %v244_v56 = vld [vmem:[%s1845_s21 + $0x38] sm:$0xf] }
  0x2a   : > { %1633 = vmatpush3.bf16.msra.mxu0 %v1768_v24  ;;  %v1778_v24 = vld [vmem:[%s1830_s18 + $0x98] sm:$0xff]   ;;  %v370_v48 = vmul.bf16 %v306_v46, %v242_v44  ;;  %v258_v49 = vld [vmem:[%s1845_s21 + $0x70] sm:$0xf]  ;;  %v371_v53 = vmul.bf16 %v307_v47, %v243_v45  ;;  %v323_v55 = vld [vmem:[%s1850_s24 + $0x74] sm:$0xf] }
  0x2b   : > { %1665 = vmatpush3.bf16.msra.mxu1 %v1769_v25  ;;  %1634 = vmatprep.subr.bf16.mxu0 %v1770_v32  ;;  %v382_v25 = vmul.bf16 %v318_v17, %v254_v15  ;;  %v322_v54 = vld [vmem:[%s1850_s24 + $0x70] sm:$0xf]  ;;  %v245_v61 = vld [vmem:[%s1845_s21 + $0x3c] sm:$0xf]  ;;  %v308_v62 = vld [vmem:[%s1850_s24 + $0x38] sm:$0xf] }
  0x2c   : > { %1666 = vmatprep.subr.bf16.mxu1 %v1771_v37  ;;  %v309_v63 = vld [vmem:[%s1850_s24 + $0x3c] sm:$0xf]  ;;  %v324_v2 = vld [vmem:[%s1850_s24 + $0x78] sm:$0xf]  ;;  %v372_v6 = vmul.bf16 %v308_v62, %v244_v56  ;;  %v1784_v10 = vld [vmem:[%s1830_s18 + $0xb0] sm:$0xff]  }
  0x2d   : > { %v261_v1 = vld [vmem:[%s1845_s21 + $0x7c] sm:$0xf]  ;;  %v373_v7 = vmul.bf16 %v309_v63, %v245_v61  ;;  %v1785_v11 = vld [vmem:[%s1830_s18 + $0xf0] sm:$0xff]   ;;  %v262_v12 = vld [vmem:[%s1845_s21 + $0x80] sm:$0xf] }
  0x2e   : > { %1635 = vmatpush3.bf16.msra.mxu0 %v1770_v32  ;;  %v257_v32 = vld [vmem:[%s1845_s21 + $0x6c] sm:$0xf]  ;;  %v263_v13 = vld [vmem:[%s1845_s21 + $0x84] sm:$0xf]  ;;  %v1786_v15 = vld [vmem:[%s1830_s18 + $0xb8] sm:$0xff]  }
  0x2f   : > { %1667 = vmatpush3.bf16.msra.mxu1 %v1771_v37  ;;  %1684 = vmatprep.subr.bf16.mxu0 %v1772_v50  ;;  %v1506_v37 = vcombine.low %v382_v25, %v383_v26  ;;  %v385_v42 = vmul.bf16 %v321_v34, %v257_v32  ;;  %v1493_v14 = vcombine.low %v372_v6, %v373_v7  ;;  %v326_v16 = vld [vmem:[%s1850_s24 + $0x80] sm:$0xf]  ;;  %v327_v17 = vld [vmem:[%s1850_s24 + $0x84] sm:$0xf]  ;;  %v1787_v20 = vld [vmem:[%s1830_s18 + $0xf8] sm:$0xff]  }
  0x30   : > { %1716 = vmatprep.subr.bf16.mxu1 %v1773_v51  ;;  %v390_v21 = vmul.bf16 %v326_v16, %v262_v12  ;;  %v391_v22 = vmul.bf16 %v327_v17, %v263_v13  ;;  %v343_v25 = vld [vmem:[%s1850_s24 + $0xc4] sm:$0xf]  ;;  %v264_v28 = vld [vmem:[%s1845_s21 + $0x88] sm:$0xf]  ;;  %v265_v29 = vld [vmem:[%s1845_s21 + $0x8c] sm:$0xf] }
  0x31   : > { %1637 = vmatmul.mubr.bf16.vlgmr.msra.gmra.mrb[0].mxu0 %v1487_v58  ;;  %v1507_v57 = vcombine.low %v384_v41, %v385_v42  ;;  %v1783_v58 = vld [vmem:[%s1830_s18 + $0xe8] sm:$0xff]   ;;  %v330_v44 = vld [vmem:[%s1850_s24 + $0x90] sm:$0xf]  ;;  %v331_v45 = vld [vmem:[%s1850_s24 + $0x94] sm:$0xf] }
  0x32   : > { %1669 = vmatmul.mubr.bf16.vlgmr.msra.gmra.mrb[0].mxu1 %v1503_v0  ;;  %1685 = vmatpush3.bf16.msra.mxu0 %v1772_v50  ;;  %v259_v50 = vld [vmem:[%s1845_s21 + $0x74] sm:$0xf]  ;;  %v260_v0 = vld [vmem:[%s1845_s21 + $0x78] sm:$0xf]  ;;  %v1518_v31 = vcombine.low %v390_v21, %v391_v22  ;;  %v329_v32 = vld [vmem:[%s1850_s24 + $0x8c] sm:$0xf] }
  0x33   : > { %1717 = vmatpush3.bf16.msra.mxu1 %v1773_v51  ;;  %1686 = vmatprep.subr.bf16.mxu0 %v1774_v59  ;;  %v1491_v51 = vcombine.low %v368_v38, %v369_v39  ;;  %v387_v60 = vmul.bf16 %v323_v55, %v259_v50  ;;  %v280_v33 = vld [vmem:[%s1845_s21 + $0xc8] sm:$0xf]  ;;  %v281_v34 = vld [vmem:[%s1845_s21 + $0xcc] sm:$0xf]  ;;  %v346_v50 = vld [vmem:[%s1850_s24 + $0xd0] sm:$0xf] }
  0x34   : > { %1718 = vmatprep.subr.bf16.mxu1 %v1775_v3  ;;  %1640 = vmatprep.mubr.bf16.mxu0 %v1488_v4  ;;  %v325_v4 = vld [vmem:[%s1850_s24 + $0x7c] sm:$0xf]  ;;  %v344_v38 = vld [vmem:[%s1850_s24 + $0xc8] sm:$0xf]  ;;  %v345_v39 = vld [vmem:[%s1850_s24 + $0xcc] sm:$0xf] }
  0x35   : > { %1672 = vmatprep.mubr.bf16.mxu1 %v1504_v5  ;;  %v389_v9 = vmul.bf16 %v325_v4, %v261_v1  ;;  %v408_v41 = vmul.bf16 %v344_v38, %v280_v33  ;;  %v409_v42 = vmul.bf16 %v345_v39, %v281_v34  ;;  %v285_v62 = vld [vmem:[%s1845_s21 + $0xdc] sm:$0xf]  ;;  %v348_v63 = vld [vmem:[%s1850_s24 + $0xd8] sm:$0xf]  ;;  %v334_v4 = vld [vmem:[%s1850_s24 + $0xa0] sm:$0xf] }
  0x36   : > { %1687 = vmatpush3.bf16.msra.mxu0 %v1774_v59  ;;  %v386_v59 = vmul.bf16 %v322_v54, %v258_v49  ;;  %v283_v49 = vld [vmem:[%s1845_s21 + $0xd4] sm:$0xf]  ;;  %v269_v54 = vld [vmem:[%s1845_s21 + $0x9c] sm:$0xf]  ;;  %v286_v6 = vld [vmem:[%s1845_s21 + $0xe0] sm:$0xf] }
  0x37   : > { %1719 = vmatpush3.bf16.msra.mxu1 %v1775_v3  ;;  %1688 = vmatprep.subr.bf16.mxu0 %v1776_v8  ;;  %v1492_v3 = vcombine.low %v370_v48, %v371_v53  ;;  %v282_v48 = vld [vmem:[%s1845_s21 + $0xd0] sm:$0xf]  ;;  %v268_v53 = vld [vmem:[%s1845_s21 + $0x98] sm:$0xf]  ;;  %v287_v7 = vld [vmem:[%s1845_s21 + $0xe4] sm:$0xf] }
  0x38   : > { %1720 = vmatprep.subr.bf16.mxu1 %v1777_v18  ;;  %v1508_v5 = vcombine.low %v386_v59, %v387_v60  ;;  %v284_v59 = vld [vmem:[%s1845_s21 + $0xd8] sm:$0xf]  ;;  %v1535_v60 = vcombine.low %v408_v41, %v409_v42  ;;  %v351_v12 = vld [vmem:[%s1850_s24 + $0xe4] sm:$0xf]  ;;  %v337_v21 = vld [vmem:[%s1850_s24 + $0xac] sm:$0xf] }
  0x39   : > { %1641 = vmatmul.mubr.bf16.gmra.mrb[4].mxu0 %v1489_v23  ;;  %v279_v23 = vld [vmem:[%s1845_s21 + $0xc4] sm:$0xf]  ;;  %v415_v17 = vmul.bf16 %v351_v12, %v287_v7  ;;  %v288_v22 = vld [vmem:[%s1845_s21 + $0xe8] sm:$0xf]  ;;  %v290_v33 = vld [vmem:[%s1845_s21 + $0xf0] sm:$0xf] }
  0x3a   : > { %1673 = vmatmul.mubr.bf16.gmra.mrb[4].mxu1 %v1505_v30  ;;  %1689 = vmatpush3.bf16.msra.mxu0 %v1776_v8  ;;  %v388_v8 = vmul.bf16 %v324_v2, %v260_v0  ;;  %v407_v27 = vmul.bf16 %v343_v25, %v279_v23  ;;  %v328_v30 = vld [vmem:[%s1850_s24 + $0x88] sm:$0xf]  ;;  %v349_v0 = vld [vmem:[%s1850_s24 + $0xdc] sm:$0xf]  ;;  %v270_v2 = vld [vmem:[%s1845_s21 + $0xa0] sm:$0xf] }
  0x3b   : > { %1721 = vmatpush3.bf16.msra.mxu1 %v1777_v18  ;;  %1690 = vmatprep.subr.bf16.mxu0 %v1778_v24  ;;  %v278_v18 = vld [vmem:[%s1845_s21 + $0xc0] sm:$0xf]  ;;  %v413_v13 = vmul.bf16 %v349_v0, %v285_v62  ;;  %v289_v23 = vld [vmem:[%s1845_s21 + $0xec] sm:$0xf]  ;;  %v291_v34 = vld [vmem:[%s1845_s21 + $0xf4] sm:$0xf] }
  0x3c   : > { %1722 = vmatprep.subr.bf16.mxu1 %v1779_v35  ;;  %1644 = vmatprep.mubr.bf16.mxu0 %v1490_v36  ;;  %v1509_v19 = vcombine.low %v388_v8, %v389_v9  ;;  %v392_v36 = vmul.bf16 %v328_v30, %v264_v28  ;;  %v353_v25 = vld [vmem:[%s1850_s24 + $0xec] sm:$0xf]  ;;  %v275_v28 = vld [vmem:[%s1845_s21 + $0xb4] sm:$0xf]  ;;  %v276_v38 = vld [vmem:[%s1845_s21 + $0xb8] sm:$0xf] }
  0x3d   : > { %1676 = vmatprep.mubr.bf16.mxu1 %v1506_v37  ;;  %v393_v37 = vmul.bf16 %v329_v32, %v265_v29  ;;  %v338_v29 = vld [vmem:[%s1850_s24 + $0xb0] sm:$0xf]  ;;  %v339_v30 = vld [vmem:[%s1850_s24 + $0xb4] sm:$0xf]  ;;  %v277_v39 = vld [vmem:[%s1845_s21 + $0xbc] sm:$0xf] }
  0x3e   : > { %1691 = vmatpush3.bf16.msra.mxu0 %v1778_v24  ;;  %v342_v24 = vld [vmem:[%s1850_s24 + $0xc0] sm:$0xf] }
  0x3f   : > { %1723 = vmatpush3.bf16.msra.mxu1 %v1779_v35  ;;  %1692 = vmatprep.subr.bf16.mxu0 %v1780_v40  ;;  %v406_v26 = vmul.bf16 %v342_v24, %v278_v18  ;;  %v1519_v55 = vcombine.low %v392_v36, %v393_v37  ;;  %v272_v18 = vld [vmem:[%s1845_s21 + $0xa8] sm:$0xf]  ;;  %v355_v36 = vld [vmem:[%s1850_s24 + $0xf4] sm:$0xf] }
  0x40   : > { %1724 = vmatprep.subr.bf16.mxu1 %v1781_v43  ;;  %v352_v24 = vld [vmem:[%s1850_s24 + $0xe8] sm:$0xf] }
  0x41   : > { %1645 = vmatmul.mubr.bf16.gmra.mrb[8].mxu0 %v1491_v51  ;;  %v1534_v35 = vcombine.low %v406_v26, %v407_v27  ;;  %v347_v51 = vld [vmem:[%s1850_s24 + $0xd4] sm:$0xf]  ;;  %v274_v26 = vld [vmem:[%s1845_s21 + $0xb0] sm:$0xf] }
  0x42   : > { %1677 = vmatmul.mubr.bf16.gmra.mrb[8].mxu1 %v1507_v57  ;;  %1693 = vmatpush3.bf16.msra.mxu0 %v1780_v40  ;;  %v266_v40 = vld [vmem:[%s1845_s21 + $0x90] sm:$0xf]  ;;  %v411_v56 = vmul.bf16 %v347_v51, %v283_v49  ;;  %v332_v57 = vld [vmem:[%s1850_s24 + $0x98] sm:$0xf]  ;;  %v402_v49 = vmul.bf16 %v338_v29, %v274_v26 }
  0x43   : > { %1725 = vmatpush3.bf16.msra.mxu1 %v1781_v43  ;;  %1694 = vmatprep.subr.bf16.mxu0 %v1782_v52  ;;  %v267_v43 = vld [vmem:[%s1845_s21 + $0x94] sm:$0xf]  ;;  %v394_v46 = vmul.bf16 %v330_v44, %v266_v40  ;;  %v396_v8 = vmul.bf16 %v332_v57, %v268_v53  ;;  %v340_v40 = vld [vmem:[%s1850_s24 + $0xb8] sm:$0xf]  ;;  %v403_v53 = vmul.bf16 %v339_v30, %v275_v28 }
  0x44   : > { %1726 = vmatprep.subr.bf16.mxu1 %v1783_v58  ;;  %1648 = vmatprep.mubr.bf16.mxu0 %v1492_v3  ;;  %v395_v47 = vmul.bf16 %v331_v45, %v267_v43  ;;  %v271_v3 = vld [vmem:[%s1845_s21 + $0xa4] sm:$0xf]  ;;  %v341_v43 = vld [vmem:[%s1850_s24 + $0xbc] sm:$0xf]  ;;  %v404_v44 = vmul.bf16 %v340_v40, %v276_v38  ;;  %v292_v45 = vld [vmem:[%s1845_s21 + $0xf8] sm:$0xf]  ;;  %v419_v57 = vmul.bf16 %v355_v36, %v291_v34 }
  0x45   : > { %1680 = vmatprep.mubr.bf16.mxu1 %v1508_v5  ;;  %v335_v5 = vld [vmem:[%s1850_s24 + $0xa4] sm:$0xf]  ;;  %v356_v51 = vld [vmem:[%s1850_s24 + $0xf8] sm:$0xf]  ;;  %v1524_v62 = vcombine.low %v402_v49, %v403_v53 }
  0x46   : > { %1695 = vmatpush3.bf16.msra.mxu0 %v1782_v52  ;;  %v410_v52 = vmul.bf16 %v346_v50, %v282_v48  ;;  %v1520_v61 = vcombine.low %v394_v46, %v395_v47  ;;  %v293_v46 = vld [vmem:[%s1845_s21 + $0xfc] sm:$0xf]  ;;  %v416_v47 = vmul.bf16 %v352_v24, %v288_v22  ;;  %v417_v48 = vmul.bf16 %v353_v25, %v289_v23 }
  0x47   : > { %1727 = vmatpush3.bf16.msra.mxu1 %v1783_v58  ;;  %1696 = vmatprep.subr.bf16.mxu0 %v1784_v10  ;;  %v333_v58 = vld [vmem:[%s1850_s24 + $0x9c] sm:$0xf]  ;;  %v405_v50 = vmul.bf16 %v341_v43, %v277_v39 }
  0x48   : > { %1728 = vmatprep.subr.bf16.mxu1 %v1785_v11  ;;  %v1536_v1 = vcombine.low %v410_v52, %v411_v56  ;;  %v397_v9 = vmul.bf16 %v333_v58, %v269_v54  ;;  %v357_v52 = vld [vmem:[%s1850_s24 + $0xfc] sm:$0xf]  ;;  %v420_v54 = vmul.bf16 %v356_v51, %v292_v45 }
  0x49   : > { %1649 = vmatmul.mubr.bf16.gmra.mrb[12].mxu0 %v1493_v14  ;;  %v398_v14 = vmul.bf16 %v334_v4, %v270_v2  ;;  %v1525_v58 = vcombine.low %v404_v44, %v405_v50 }
  0x4a   : > { %1681 = vmatmul.mubr.bf16.gmra.mrb[12].mxu1 %v1509_v19  ;;  %1697 = vmatpush3.bf16.msra.mxu0 %v1784_v10  ;;  %v412_v10 = vmul.bf16 %v348_v63, %v284_v59  ;;  %v273_v19 = vld [vmem:[%s1845_s21 + $0xac] sm:$0xf]  ;;  %v1521_v27 = vcombine.low %v396_v8, %v397_v9 }
  0x4b   : > { %1729 = vmatpush3.bf16.msra.mxu1 %v1785_v11  ;;  %1698 = vmatprep.subr.bf16.mxu0 %v1786_v15  ;;  %v350_v11 = vld [vmem:[%s1850_s24 + $0xe0] sm:$0xf]  ;;  %v401_v42 = vmul.bf16 %v337_v21, %v273_v19 }
  0x4c   : > { %1730 = vmatprep.subr.bf16.mxu1 %v1787_v20  ;;  %1700 = vmatprep.mubr.bf16.mxu0 %v1518_v31  ;;  %v414_v16 = vmul.bf16 %v350_v11, %v286_v6  ;;  %v1537_v31 = vcombine.low %v412_v10, %v413_v13 }
  0x4d   : > { %1732 = vmatprep.mubr.bf16.mxu1 %v1534_v35  ;;  %v354_v35 = vld [vmem:[%s1850_s24 + $0xf0] sm:$0xf] }
  0x4e   : > { %1699 = vmatpush3.bf16.msra.mxu0 %v1786_v15  ;;  %v399_v15 = vmul.bf16 %v335_v5, %v271_v3  ;;  %v1538_v37 = vcombine.low %v414_v16, %v415_v17  ;;  %v418_v56 = vmul.bf16 %v354_v35, %v290_v33 }
  0x4f   : > { %1731 = vmatpush3.bf16.msra.mxu1 %v1787_v20  ;;  %v336_v20 = vld [vmem:[%s1850_s24 + $0xa8] sm:$0xf] }
  0x50   : > { %v1522_v32 = vcombine.low %v398_v14, %v399_v15  ;;  %v400_v41 = vmul.bf16 %v336_v20, %v272_v18  ;;  %v1540_v63 = vcombine.low %v418_v56, %v419_v57 }
  0x51   : > { %1701 = vmatmul.mubr.bf16.vlgmr.msra.gmra.mrb[16].mxu0 %v1519_v55  ;;  %v421_v55 = vmul.bf16 %v357_v52, %v293_v46 }
  0x52   : > { %1733 = vmatmul.mubr.bf16.vlgmr.msra.gmra.mrb[16].mxu1 %v1535_v60  ;;  %1704 = vmatprep.mubr.bf16.mxu0 %v1520_v61  ;;  %v1523_v60 = vcombine.low %v400_v41, %v401_v42  ;;  %v1539_v61 = vcombine.low %v416_v47, %v417_v48 }
  0x53   : > { %1736 = vmatprep.mubr.bf16.mxu1 %v1536_v1  ;;  %v1541_v59 = vcombine.low %v420_v54, %v421_v55 }
  0x59   : > { %1705 = vmatmul.mubr.bf16.gmra.mrb[20].mxu0 %v1521_v27 }
  0x5a   : > { %1737 = vmatmul.mubr.bf16.gmra.mrb[20].mxu1 %v1537_v31  ;;  %1708 = vmatprep.mubr.bf16.mxu0 %v1522_v32 }
  0x5b   : > { %1740 = vmatprep.mubr.bf16.mxu1 %v1538_v37 }
  0x61   : > { %1709 = vmatmul.mubr.bf16.gmra.mrb[24].mxu0 %v1523_v60 }
  0x62   : > { %1741 = vmatmul.mubr.bf16.gmra.mrb[24].mxu1 %v1539_v61  ;;  %1712 = vmatprep.mubr.bf16.mxu0 %v1524_v62 }
  0x63   : > { %1744 = vmatprep.mubr.bf16.mxu1 %v1540_v63 }
  0x69   : > { %1713 = vmatmul.mubr.bf16.gmra.mrb[28].mxu0 %v1525_v58 }
  0x6a   : > { %1745 = vmatmul.mubr.bf16.gmra.mrb[28].mxu1 %v1541_v59 }
 0x104   : > { %v1638_v0 = vpop.f32.mrb[0].mxu0 }
 0x105   : > { %v1260_v1 = vmul.f32 1.1111112, %v1638_v0  ;;  %v1670_v2 = vpop.f32.mrb[0].mxu1  ;;  %v616_v3 = vpop.f32.mrb[1].mxu0 }
 0x106   : > { %v1276_v4 = vmul.f32 1.1111112, %v1670_v2  ;;  %v1258_v5 = vmul.f32 1.1111112, %v616_v3  ;;  %v809_v6 = vpop.f32.mrb[1].mxu1  ;;  %v1639_v7 = vpop.f32.mrb[2].mxu0 }
 0x107   : > { %1325 = vst.msk [vmem:[%s2006_s28 + $0x10] sm:$0xff] %vm1322_vm0, %v1260_v1  ;;  %v1274_v8 = vmul.f32 1.1111112, %v809_v6  ;;  %v1261_v9 = vmul.f32 1.1111112, %v1639_v7  ;;  %v1671_v10 = vpop.f32.mrb[2].mxu1 }
 0x108   : > { %v619_v11 = vpop.f32.mrb[3].mxu0  ;;  %1341 = vst.msk [vmem:[%s2006_s28 + $0x90] sm:$0xff] %vm1322_vm0, %v1276_v4  ;;  %1323 = vst.msk [vmem:[%s2006_s28] sm:$0xff] %vm1322_vm0, %v1258_v5  ;;  %v1277_v12 = vmul.f32 1.1111112, %v1671_v10  ;;  %v812_v14 = vpop.f32.mrb[3].mxu1 }
 0x109   : > { %v1259_v13 = vmul.f32 1.1111112, %v619_v11  ;;  %1339 = vst.msk [vmem:[%s2006_s28 + $0x80] sm:$0xff] %vm1322_vm0, %v1274_v8  ;;  %1326 = vst.msk [vmem:[%s2006_s28 + $0x18] sm:$0xff] %vm1322_vm0, %v1261_v9  ;;  %v1275_v15 = vmul.f32 1.1111112, %v812_v14 }
 0x10a   : > { %1342 = vst.msk [vmem:[%s2006_s28 + $0x98] sm:$0xff] %vm1322_vm0, %v1277_v12 }
 0x10b   : > { %1324 = vst.msk [vmem:[%s2006_s28 + $0x8] sm:$0xff] %vm1322_vm0, %v1259_v13  ;;  %1340 = vst.msk [vmem:[%s2006_s28 + $0x88] sm:$0xff] %vm1322_vm0, %v1275_v15 }
 0x10c   : > { %v1642_v16 = vpop.f32.mrb[4].mxu0 }
 0x10d   : > { %v1264_v17 = vmul.f32 1.1111112, %v1642_v16  ;;  %v1674_v18 = vpop.f32.mrb[4].mxu1  ;;  %v632_v19 = vpop.f32.mrb[5].mxu0 }
 0x10e   : > { %v1280_v20 = vmul.f32 1.1111112, %v1674_v18  ;;  %v1262_v21 = vmul.f32 1.1111112, %v632_v19  ;;  %v825_v22 = vpop.f32.mrb[5].mxu1  ;;  %v1643_v23 = vpop.f32.mrb[6].mxu0 }
 0x10f   : > { %1329 = vst.msk [vmem:[%s2006_s28 + $0x30] sm:$0xff] %vm1322_vm0, %v1264_v17  ;;  %v1278_v24 = vmul.f32 1.1111112, %v825_v22  ;;  %v1265_v25 = vmul.f32 1.1111112, %v1643_v23  ;;  %v1675_v26 = vpop.f32.mrb[6].mxu1 }
 0x110   : > { %v635_v27 = vpop.f32.mrb[7].mxu0  ;;  %1345 = vst.msk [vmem:[%s2006_s28 + $0xb0] sm:$0xff] %vm1322_vm0, %v1280_v20  ;;  %1327 = vst.msk [vmem:[%s2006_s28 + $0x20] sm:$0xff] %vm1322_vm0, %v1262_v21  ;;  %v1281_v28 = vmul.f32 1.1111112, %v1675_v26  ;;  %v828_v30 = vpop.f32.mrb[7].mxu1 }
 0x111   : > { %v1263_v29 = vmul.f32 1.1111112, %v635_v27  ;;  %1343 = vst.msk [vmem:[%s2006_s28 + $0xa0] sm:$0xff] %vm1322_vm0, %v1278_v24  ;;  %1330 = vst.msk [vmem:[%s2006_s28 + $0x38] sm:$0xff] %vm1322_vm0, %v1265_v25  ;;  %v1279_v31 = vmul.f32 1.1111112, %v828_v30 }
 0x112   : > { %1346 = vst.msk [vmem:[%s2006_s28 + $0xb8] sm:$0xff] %vm1322_vm0, %v1281_v28 }
 0x113   : > { %1328 = vst.msk [vmem:[%s2006_s28 + $0x28] sm:$0xff] %vm1322_vm0, %v1263_v29  ;;  %1344 = vst.msk [vmem:[%s2006_s28 + $0xa8] sm:$0xff] %vm1322_vm0, %v1279_v31 }
 0x114   : > { %v1646_v32 = vpop.f32.mrb[8].mxu0 }
 0x115   : > { %v1268_v33 = vmul.f32 1.1111112, %v1646_v32  ;;  %v1678_v34 = vpop.f32.mrb[8].mxu1  ;;  %v648_v35 = vpop.f32.mrb[9].mxu0 }
 0x116   : > { %v1284_v36 = vmul.f32 1.1111112, %v1678_v34  ;;  %v1266_v37 = vmul.f32 1.1111112, %v648_v35  ;;  %v841_v38 = vpop.f32.mrb[9].mxu1  ;;  %v1647_v39 = vpop.f32.mrb[10].mxu0 }
 0x117   : > { %1333 = vst.msk [vmem:[%s2006_s28 + $0x50] sm:$0xff] %vm1322_vm0, %v1268_v33  ;;  %v1282_v40 = vmul.f32 1.1111112, %v841_v38  ;;  %v1269_v41 = vmul.f32 1.1111112, %v1647_v39  ;;  %v1679_v42 = vpop.f32.mrb[10].mxu1 }
 0x118   : > { %v651_v43 = vpop.f32.mrb[11].mxu0  ;;  %1349 = vst.msk [vmem:[%s2006_s28 + $0xd0] sm:$0xff] %vm1322_vm0, %v1284_v36  ;;  %1331 = vst.msk [vmem:[%s2006_s28 + $0x40] sm:$0xff] %vm1322_vm0, %v1266_v37  ;;  %v1285_v44 = vmul.f32 1.1111112, %v1679_v42  ;;  %v844_v46 = vpop.f32.mrb[11].mxu1 }
 0x119   : > { %v1267_v45 = vmul.f32 1.1111112, %v651_v43  ;;  %1347 = vst.msk [vmem:[%s2006_s28 + $0xc0] sm:$0xff] %vm1322_vm0, %v1282_v40  ;;  %1334 = vst.msk [vmem:[%s2006_s28 + $0x58] sm:$0xff] %vm1322_vm0, %v1269_v41  ;;  %v1283_v47 = vmul.f32 1.1111112, %v844_v46 }
 0x11a   : > { %1350 = vst.msk [vmem:[%s2006_s28 + $0xd8] sm:$0xff] %vm1322_vm0, %v1285_v44 }
 0x11b   : > { %1332 = vst.msk [vmem:[%s2006_s28 + $0x48] sm:$0xff] %vm1322_vm0, %v1267_v45  ;;  %1348 = vst.msk [vmem:[%s2006_s28 + $0xc8] sm:$0xff] %vm1322_vm0, %v1283_v47 }
 0x11c   : > { %v1650_v48 = vpop.f32.mrb[12].mxu0 }
 0x11d   : > { %v1272_v49 = vmul.f32 1.1111112, %v1650_v48  ;;  %v1682_v50 = vpop.f32.mrb[12].mxu1  ;;  %v664_v51 = vpop.f32.mrb[13].mxu0 }
 0x11e   : > { %v1288_v52 = vmul.f32 1.1111112, %v1682_v50  ;;  %v1270_v53 = vmul.f32 1.1111112, %v664_v51  ;;  %v857_v54 = vpop.f32.mrb[13].mxu1  ;;  %v1651_v55 = vpop.f32.mrb[14].mxu0 }
 0x11f   : > { %1337 = vst.msk [vmem:[%s2006_s28 + $0x70] sm:$0xff] %vm1322_vm0, %v1272_v49  ;;  %v1286_v56 = vmul.f32 1.1111112, %v857_v54  ;;  %v1273_v57 = vmul.f32 1.1111112, %v1651_v55  ;;  %v1683_v58 = vpop.f32.mrb[14].mxu1 }
 0x120   : > { %v667_v59 = vpop.f32.mrb[15].mxu0  ;;  %1353 = vst.msk [vmem:[%s2006_s28 + $0xf0] sm:$0xff] %vm1322_vm0, %v1288_v52  ;;  %1335 = vst.msk [vmem:[%s2006_s28 + $0x60] sm:$0xff] %vm1322_vm0, %v1270_v53  ;;  %v1289_v60 = vmul.f32 1.1111112, %v1683_v58  ;;  %v860_v62 = vpop.f32.mrb[15].mxu1 }
 0x121   : > { %v1271_v61 = vmul.f32 1.1111112, %v667_v59  ;;  %1351 = vst.msk [vmem:[%s2006_s28 + $0xe0] sm:$0xff] %vm1322_vm0, %v1286_v56  ;;  %1338 = vst.msk [vmem:[%s2006_s28 + $0x78] sm:$0xff] %vm1322_vm0, %v1273_v57  ;;  %v1287_v63 = vmul.f32 1.1111112, %v860_v62 }
 0x122   : > { %1354 = vst.msk [vmem:[%s2006_s28 + $0xf8] sm:$0xff] %vm1322_vm0, %v1289_v60 }
 0x123   : > { %1336 = vst.msk [vmem:[%s2006_s28 + $0x68] sm:$0xff] %vm1322_vm0, %v1271_v61  ;;  %1352 = vst.msk [vmem:[%s2006_s28 + $0xe8] sm:$0xff] %vm1322_vm0, %v1287_v63 }
 0x124   : > { %v1702_v0 = vpop.f32.mrb[16].mxu0 }
 0x125   : > { %v1292_v1 = vmul.f32 1.1111112, %v1702_v0  ;;  %v1734_v2 = vpop.f32.mrb[16].mxu1  ;;  %v1002_v3 = vpop.f32.mrb[17].mxu0 }
 0x126   : > { %v1308_v4 = vmul.f32 1.1111112, %v1734_v2  ;;  %v1290_v5 = vmul.f32 1.1111112, %v1002_v3  ;;  %v1195_v6 = vpop.f32.mrb[17].mxu1  ;;  %v1703_v7 = vpop.f32.mrb[18].mxu0 }
 0x127   : > { %1357 = vst.msk [vmem:[%s2006_s28 + $0x110] sm:$0xff] %vm1322_vm0, %v1292_v1  ;;  %v1306_v8 = vmul.f32 1.1111112, %v1195_v6  ;;  %v1293_v9 = vmul.f32 1.1111112, %v1703_v7  ;;  %v1735_v10 = vpop.f32.mrb[18].mxu1 }
 0x128   : > { %v1005_v11 = vpop.f32.mrb[19].mxu0  ;;  %1373 = vst.msk [vmem:[%s2006_s28 + $0x190] sm:$0xff] %vm1322_vm0, %v1308_v4  ;;  %1355 = vst.msk [vmem:[%s2006_s28 + $0x100] sm:$0xff] %vm1322_vm0, %v1290_v5  ;;  %v1309_v12 = vmul.f32 1.1111112, %v1735_v10  ;;  %v1198_v14 = vpop.f32.mrb[19].mxu1 }
 0x129   : > { %v1291_v13 = vmul.f32 1.1111112, %v1005_v11  ;;  %1371 = vst.msk [vmem:[%s2006_s28 + $0x180] sm:$0xff] %vm1322_vm0, %v1306_v8  ;;  %1358 = vst.msk [vmem:[%s2006_s28 + $0x118] sm:$0xff] %vm1322_vm0, %v1293_v9  ;;  %v1307_v15 = vmul.f32 1.1111112, %v1198_v14 }
 0x12a   : > { %1374 = vst.msk [vmem:[%s2006_s28 + $0x198] sm:$0xff] %vm1322_vm0, %v1309_v12 }
 0x12b   : > { %1356 = vst.msk [vmem:[%s2006_s28 + $0x108] sm:$0xff] %vm1322_vm0, %v1291_v13  ;;  %1372 = vst.msk [vmem:[%s2006_s28 + $0x188] sm:$0xff] %vm1322_vm0, %v1307_v15 }
 0x12c   : > { %v1706_v16 = vpop.f32.mrb[20].mxu0 }
 0x12d   : > { %v1296_v17 = vmul.f32 1.1111112, %v1706_v16  ;;  %v1738_v18 = vpop.f32.mrb[20].mxu1  ;;  %v1018_v19 = vpop.f32.mrb[21].mxu0 }
 0x12e   : > { %v1312_v20 = vmul.f32 1.1111112, %v1738_v18  ;;  %v1294_v21 = vmul.f32 1.1111112, %v1018_v19  ;;  %v1211_v22 = vpop.f32.mrb[21].mxu1  ;;  %v1707_v23 = vpop.f32.mrb[22].mxu0 }
 0x12f   : > { %1361 = vst.msk [vmem:[%s2006_s28 + $0x130] sm:$0xff] %vm1322_vm0, %v1296_v17  ;;  %v1310_v24 = vmul.f32 1.1111112, %v1211_v22  ;;  %v1297_v25 = vmul.f32 1.1111112, %v1707_v23  ;;  %v1739_v26 = vpop.f32.mrb[22].mxu1 }
 0x130   : > { %v1021_v27 = vpop.f32.mrb[23].mxu0  ;;  %1377 = vst.msk [vmem:[%s2006_s28 + $0x1b0] sm:$0xff] %vm1322_vm0, %v1312_v20  ;;  %1359 = vst.msk [vmem:[%s2006_s28 + $0x120] sm:$0xff] %vm1322_vm0, %v1294_v21  ;;  %v1313_v28 = vmul.f32 1.1111112, %v1739_v26  ;;  %v1214_v30 = vpop.f32.mrb[23].mxu1 }
 0x131   : > { %v1295_v29 = vmul.f32 1.1111112, %v1021_v27  ;;  %1375 = vst.msk [vmem:[%s2006_s28 + $0x1a0] sm:$0xff] %vm1322_vm0, %v1310_v24  ;;  %1362 = vst.msk [vmem:[%s2006_s28 + $0x138] sm:$0xff] %vm1322_vm0, %v1297_v25  ;;  %v1311_v31 = vmul.f32 1.1111112, %v1214_v30 }
 0x132   : > { %1378 = vst.msk [vmem:[%s2006_s28 + $0x1b8] sm:$0xff] %vm1322_vm0, %v1313_v28 }
 0x133   : > { %1360 = vst.msk [vmem:[%s2006_s28 + $0x128] sm:$0xff] %vm1322_vm0, %v1295_v29  ;;  %1376 = vst.msk [vmem:[%s2006_s28 + $0x1a8] sm:$0xff] %vm1322_vm0, %v1311_v31 }
 0x134   : > { %v1710_v32 = vpop.f32.mrb[24].mxu0 }
 0x135   : > { %v1300_v33 = vmul.f32 1.1111112, %v1710_v32  ;;  %v1742_v34 = vpop.f32.mrb[24].mxu1  ;;  %v1034_v35 = vpop.f32.mrb[25].mxu0 }
 0x136   : > { %v1316_v36 = vmul.f32 1.1111112, %v1742_v34  ;;  %v1298_v37 = vmul.f32 1.1111112, %v1034_v35  ;;  %v1227_v38 = vpop.f32.mrb[25].mxu1  ;;  %v1711_v39 = vpop.f32.mrb[26].mxu0 }
 0x137   : > { %1365 = vst.msk [vmem:[%s2006_s28 + $0x150] sm:$0xff] %vm1322_vm0, %v1300_v33  ;;  %v1314_v40 = vmul.f32 1.1111112, %v1227_v38  ;;  %v1301_v41 = vmul.f32 1.1111112, %v1711_v39  ;;  %v1743_v42 = vpop.f32.mrb[26].mxu1 }
 0x138   : > { %v1037_v43 = vpop.f32.mrb[27].mxu0  ;;  %1381 = vst.msk [vmem:[%s2006_s28 + $0x1d0] sm:$0xff] %vm1322_vm0, %v1316_v36  ;;  %1363 = vst.msk [vmem:[%s2006_s28 + $0x140] sm:$0xff] %vm1322_vm0, %v1298_v37  ;;  %v1317_v44 = vmul.f32 1.1111112, %v1743_v42  ;;  %v1230_v46 = vpop.f32.mrb[27].mxu1 }
 0x139   : > { %v1299_v45 = vmul.f32 1.1111112, %v1037_v43  ;;  %1379 = vst.msk [vmem:[%s2006_s28 + $0x1c0] sm:$0xff] %vm1322_vm0, %v1314_v40  ;;  %1366 = vst.msk [vmem:[%s2006_s28 + $0x158] sm:$0xff] %vm1322_vm0, %v1301_v41  ;;  %v1315_v47 = vmul.f32 1.1111112, %v1230_v46 }
 0x13a   : > { %1382 = vst.msk [vmem:[%s2006_s28 + $0x1d8] sm:$0xff] %vm1322_vm0, %v1317_v44 }
 0x13b   : > { %1364 = vst.msk [vmem:[%s2006_s28 + $0x148] sm:$0xff] %vm1322_vm0, %v1299_v45  ;;  %1380 = vst.msk [vmem:[%s2006_s28 + $0x1c8] sm:$0xff] %vm1322_vm0, %v1315_v47 }
 0x13c   : > { %v1714_v48 = vpop.f32.mrb[28].mxu0 }
 0x13d   : > { %v1304_v49 = vmul.f32 1.1111112, %v1714_v48  ;;  %v1746_v50 = vpop.f32.mrb[28].mxu1  ;;  %v1050_v51 = vpop.f32.mrb[29].mxu0 }
 0x13e   : > { %v1320_v52 = vmul.f32 1.1111112, %v1746_v50  ;;  %v1302_v53 = vmul.f32 1.1111112, %v1050_v51  ;;  %v1243_v54 = vpop.f32.mrb[29].mxu1  ;;  %v1715_v55 = vpop.f32.mrb[30].mxu0 }
 0x13f   : > { %1369 = vst.msk [vmem:[%s2006_s28 + $0x170] sm:$0xff] %vm1322_vm0, %v1304_v49  ;;  %v1318_v56 = vmul.f32 1.1111112, %v1243_v54  ;;  %v1305_v57 = vmul.f32 1.1111112, %v1715_v55  ;;  %v1747_v58 = vpop.f32.mrb[30].mxu1 }
 0x140   : > { %v1053_v59 = vpop.f32.mrb[31].mxu0  ;;  %1385 = vst.msk [vmem:[%s2006_s28 + $0x1f0] sm:$0xff] %vm1322_vm0, %v1320_v52  ;;  %1367 = vst.msk [vmem:[%s2006_s28 + $0x160] sm:$0xff] %vm1322_vm0, %v1302_v53  ;;  %v1321_v60 = vmul.f32 1.1111112, %v1747_v58  ;;  %v1246_v62 = vpop.f32.mrb[31].mxu1 }
 0x141   : > { %v1303_v61 = vmul.f32 1.1111112, %v1053_v59  ;;  %1383 = vst.msk [vmem:[%s2006_s28 + $0x1e0] sm:$0xff] %vm1322_vm0, %v1318_v56  ;;  %1370 = vst.msk [vmem:[%s2006_s28 + $0x178] sm:$0xff] %vm1322_vm0, %v1305_v57  ;;  %v1319_v63 = vmul.f32 1.1111112, %v1246_v62 }
 0x142   : > { %1386 = vst.msk [vmem:[%s2006_s28 + $0x1f8] sm:$0xff] %vm1322_vm0, %v1321_v60 }
 0x143   : > { %1368 = vst.msk [vmem:[%s2006_s28 + $0x168] sm:$0xff] %vm1322_vm0, %v1303_v61  ;;  %1384 = vst.msk [vmem:[%s2006_s28 + $0x1e8] sm:$0xff] %vm1322_vm0, %v1319_v63 }
 0x144 PF: > { %s13_s12 = sadd.s32 1, %s1794_s12  }
 0x145   : > { %p10_p4 = scmp.ge.s32.totalorder %s13_s12, 4  }
 0x147   :  { %12 = sbr.rel (!%p10_p4) target bundleno = 1 (0x1), region = 68 }

</bundles_post_ra>
